<compile_context>
chip_gen: v7x
topology: tpu7x:2x2x1
jax: 0.10.0
libtpu: 0.0.40
codegen_flags: <defaults>
</compile_context>

<pallas_src>
import jax
import jax.numpy as jnp
from jax.experimental import pallas as pl
from jax.experimental.pallas import tpu as pltpu

BN_EPS = 1e-5


# --------------------------------------------------------------------------- #
# Tiling / VMEM helpers
# --------------------------------------------------------------------------- #
def _choose_tiling(n, hw, per_lane_bytes, target_step_bytes, max_nb=8):
    """Pick (batch_block, spatial_tile) so one grid step moves ~target bytes."""
    lanes_target = max(128, target_step_bytes // max(per_lane_bytes, 1))
    if hw % 128 == 0 and hw > lanes_target:
        # Tile the spatial axis with a multiple-of-128 divisor of hw.
        t = (lanes_target // 128) * 128
        while hw % t != 0:
            t -= 128
        return 1, t
    # Full spatial extent per block (always legal); block batches to grow the
    # step.  max_nb bounds the static unroll inside the kernels.
    nb = 1
    for cand in range(min(n, max_nb), 0, -1):
        if n % cand == 0 and (cand == 1 or cand * hw <= lanes_target):
            nb = cand
            break
    return nb, hw


def _vmem_cap_bytes():
    try:
        info_fn = getattr(pltpu, "get_tpu_info", None)
        if info_fn is not None:
            return int(getattr(info_fn(), "vmem_capacity_bytes", 64 << 20))
    except Exception:
        pass
    return 64 << 20  # conservative default (v7x per-TC capacity)


def _vmem_limit_bytes(step_bytes):
    cap = min(_vmem_cap_bytes() // 2, 48 << 20)     # 32 MiB on v7x, 48 MiB on v5e/v6e
    need = 2 * step_bytes + (8 << 20)               # double-buffered tiles + headroom
    return int(min(max(need, 16 << 20), max(cap, need)))


# --------------------------------------------------------------------------- #
# Kernels
# --------------------------------------------------------------------------- #
def _stats_kernel(x_ref, s_ref, xs_ref):
    # x_ref: (Nb, C1, T) native dtype.  s_ref: (C1, C1), xs_ref: (C1, 1) f32 —
    # resident per-batch-block accumulators over the (arbitrary) spatial axis.
    @pl.when(pl.program_id(1) == 0)
    def _():
        s_ref[...] = jnp.zeros_like(s_ref)
        xs_ref[...] = jnp.zeros_like(xs_ref)

    nb = x_ref.shape[0]                       # static, small (<= 8)
    s_acc = jnp.zeros(s_ref.shape, jnp.float32)
    xs_acc = jnp.zeros(xs_ref.shape, jnp.float32)
    for b in range(nb):
        xb = x_ref[b].astype(jnp.float32)     # (C1, T), f32 math in vregs
        # Second moment on the MXU: xb @ xb^T (contract the lane axis).
        s_acc += jax.lax.dot_general(
            xb, xb, (((1,), (1,)), ((), ())),
            preferred_element_type=jnp.float32)
        xs_acc += jnp.sum(xb, axis=1, keepdims=True)
    s_ref[...] += s_acc
    xs_ref[...] += xs_acc


def _apply_kernel(x_ref, w_ref, shift_ref, o_ref):
    # x_ref: (Nb, C1, T); w_ref: (C2, C1) with BN scale folded in;
    # shift_ref: (C2, 1); o_ref: (Nb, C2, T).
    w = w_ref[...]
    shift = shift_ref[...]
    for b in range(x_ref.shape[0]):           # static, small (<= 8)
        y = jnp.dot(w, x_ref[b].astype(jnp.float32),
                    preferred_element_type=jnp.float32)        # (C2, T) on MXU
        o_ref[b] = jnp.maximum(y + shift, 0.0).astype(o_ref.dtype)


# --------------------------------------------------------------------------- #
# Wrapper
# --------------------------------------------------------------------------- #
def conv_bn_relu(x_nchw, weight, bias, gamma, beta):
    """Fused 1x1 Conv2d(+bias) -> training-mode BatchNorm2d -> ReLU.

    x_nchw: (N, C1, H, W); weight: (C2, C1, 1, 1); bias/gamma/beta: (C2,).
    `bias` is accepted for API fidelity but cancels exactly under the
    training-mode BN centering, so it is never read.
    """
    n, c1, h, w = x_nchw.shape
    c2 = weight.shape[0]
    hw = h * w
    m = n * hw
    itemsize = jnp.dtype(x_nchw.dtype).itemsize
    out_dtype = x_nchw.dtype

    x3d = x_nchw.reshape(n, c1, hw)                      # free view; lanes = H*W
    w2d = weight.reshape(c2, c1).astype(jnp.float32)

    # ------------- Pass 1: channel moments of x (reads only x) ---------------
    nb1, t1 = _choose_tiling(n, hw, c1 * itemsize, target_step_bytes=2 << 20)
    grid1 = (n // nb1, hw // t1)
    step1 = nb1 * c1 * t1 * itemsize
    s_part, xs_part = pl.pallas_call(
        _stats_kernel,
        out_shape=(jax.ShapeDtypeStruct((n // nb1, c1, c1), jnp.float32),
                   jax.ShapeDtypeStruct((n // nb1, c1, 1), jnp.float32)),
        grid=grid1,
        in_specs=[pl.BlockSpec((nb1, c1, t1), lambda b, t: (b, 0, t))],
        out_specs=(pl.BlockSpec((None, c1, c1), lambda b, t: (b, 0, 0)),
                   pl.BlockSpec((None, c1, 1), lambda b, t: (b, 0, 0))),
        compiler_params=pltpu.CompilerParams(
            dimension_semantics=("parallel", "arbitrary"),   # megacore on v7x
            vmem_limit_bytes=_vmem_limit_bytes(step1),
        ),
        cost_estimate=pl.CostEstimate(
            flops=2 * m * c1 * c1 + m * c1,
            transcendentals=0,
            bytes_accessed=x3d.size * itemsize + (n // nb1) * (c1 * c1 + c1) * 4,
        ),
    )(x3d)

    # Fold BN (batch statistics, biased variance, eps=1e-5) into one per-channel
    # scale/shift and fold the scale into the conv weight.  Tiny math, done once.
    s_tot = jnp.sum(s_part, axis=0)                      # (C1, C1) = sum_p x x^T
    xs_tot = jnp.sum(xs_part, axis=0)                    # (C1, 1)  = sum_p x
    ch_sum = w2d @ xs_tot                                # (C2, 1)  = sum_p y
    ch_ssq = jnp.sum((w2d @ s_tot) * w2d, axis=1, keepdims=True)   # sum_p y^2
    mean = ch_sum / m
    # NOTE: E[y^2]-E[y]^2 can lose precision when |mean| >> std.
    # TODO(synk): Welford / centered second pass if activations carry large offsets.
    var = jnp.maximum(ch_ssq / m - mean * mean, 0.0)
    inv_std = jax.lax.rsqrt(var + BN_EPS)
    scale = gamma.reshape(c2, 1).astype(jnp.float32) * inv_std
    shift = beta.reshape(c2, 1).astype(jnp.float32) - mean * scale
    w_scaled = scale * w2d                               # BN scale folded into W

    # ------------- Pass 2: y = (scale*W) @ x + shift, then ReLU --------------
    nb2, t2 = _choose_tiling(n, hw, (c1 + c2) * itemsize, target_step_bytes=4 << 20)
    grid2 = (n // nb2, hw // t2)
    step2 = nb2 * (c1 + c2) * t2 * itemsize
    out3d = pl.pallas_call(
        _apply_kernel,
        out_shape=jax.ShapeDtypeStruct((n, c2, hw), out_dtype),
        grid=grid2,
        in_specs=[pl.BlockSpec((nb2, c1, t2), lambda b, t: (b, 0, t)),
                  pl.BlockSpec((c2, c1), lambda b, t: (0, 0)),
                  pl.BlockSpec((c2, 1), lambda b, t: (0, 0))],
        out_specs=pl.BlockSpec((nb2, c2, t2), lambda b, t: (b, 0, t)),
        compiler_params=pltpu.CompilerParams(
            dimension_semantics=("parallel", "parallel"),
            vmem_limit_bytes=_vmem_limit_bytes(step2),
        ),
        cost_estimate=pl.CostEstimate(
            flops=2 * m * c1 * c2 + 2 * m * c2,
            transcendentals=0,
            bytes_accessed=(x3d.size + n * c2 * hw) * itemsize + (c2 * c1 + c2) * 4,
        ),
    )(x3d, w_scaled, shift)

    return out3d.reshape(n, c2, h, w)


# --------------------------------------------------------------------------- #
if __name__ == "__main__":
    key = jax.random.PRNGKey(0)
    kx, kw, kb, kg, kbe = jax.random.split(key, 5)

    # Small shapes consistent with the module defaults (k=1): c1=4, c2=8.
    N, C1, H, W = 2, 4, 16, 16
    C2 = 8

    x = jax.random.normal(kx, (N, C1, H, W), dtype=jnp.float32)
    weight = jax.random.normal(kw, (C2, C1, 1, 1), dtype=jnp.float32) * 0.1
    bias = jax.random.normal(kb, (C2,), dtype=jnp.float32) * 0.1
    gamma = 1.0 + 0.1 * jax.random.normal(kg, (C2,), dtype=jnp.float32)
    beta = 0.1 * jax.random.normal(kbe, (C2,), dtype=jnp.float32)

    out = conv_bn_relu(x, weight, bias, gamma, beta)
    jax.block_until_ready(out)

    # Pure-JAX reference (1x1 conv with bias + training-mode BN + ReLU).
    y_ref = (jnp.einsum("nchw,oc->nohw", x, weight.reshape(C2, C1))
             + bias[None, :, None, None])
    mu = jnp.mean(y_ref, axis=(0, 2, 3), keepdims=True)
    var = jnp.mean((y_ref - mu) ** 2, axis=(0, 2, 3), keepdims=True)
    y_ref = (y_ref - mu) * jax.lax.rsqrt(var + BN_EPS)
    y_ref = y_ref * gamma[None, :, None, None] + beta[None, :, None, None]
    y_ref = jnp.maximum(y_ref, 0.0)

    assert out.shape == (N, C2, H, W)
    assert jnp.allclose(out, y_ref, atol=1e-4, rtol=1e-4), \
        float(jnp.max(jnp.abs(out - y_ref)))
    print("KERNEL_OK")
</pallas_src>

<mosaic_0001>
module attributes {stable_mosaic.version = 11 : i64} {
  func.func @_stats_kernel(%arg0: i32, %arg1: i32, %arg2: memref<2x4x256xf32, #tpu.memory_space<vmem>>, %arg3: memref<1x4x4xf32, #tpu.memory_space<vmem>>, %arg4: memref<1x4x1xf32, #tpu.memory_space<vmem>>) attributes {dimension_semantics = [#tpu.dimension_semantics<parallel>, #tpu.dimension_semantics<arbitrary>], iteration_bounds = array<i64: 1, 1>, scalar_prefetch = 0 : i64, scratch_operands = 0 : i64, tpu.core_type = #tpu.core_type<tc>, window_params = [{transform_indices = @transform_0, window_bounds = array<i64: 2, 4, 256>}, {transform_indices = @transform_1, window_bounds = array<i64: 1, 4, 4>}, {transform_indices = @transform_2, window_bounds = array<i64: 1, 4, 1>}]} {
    %c0_i32 = arith.constant 0 : i32
    %0 = arith.cmpi eq, %arg1, %c0_i32 : i32
    %1 = arith.extui %0 : i1 to i32
    %c0_i32_0 = arith.constant 0 : i32
    %2 = arith.cmpi ne, %1, %c0_i32_0 : i32
    scf.if %2 {
      %cst_22 = arith.constant 0.000000e+00 : f32
      %31 = vector.broadcast %cst_22 : f32 to vector<4x4xf32>
      %c0_23 = arith.constant 0 : index
      %c0_24 = arith.constant 0 : index
      %c0_25 = arith.constant 0 : index
      %32 = vector.load %arg3[%c0_23, %c0_24, %c0_25] : memref<1x4x4xf32, #tpu.memory_space<vmem>>, vector<1x4x4xf32>
      %33 = vector.shape_cast %32 : vector<1x4x4xf32> to vector<4x4xf32>
      %34 = vector.shape_cast %31 : vector<4x4xf32> to vector<1x4x4xf32>
      tpu.vector_store %arg3[%c0_23, %c0_24, %c0_25], %34 {strides = array<i32>} : memref<1x4x4xf32, #tpu.memory_space<vmem>>, vector<1x4x4xf32>,
      %cst_26 = arith.constant 0.000000e+00 : f32
      %35 = vector.broadcast %cst_26 : f32 to vector<4x1xf32>
      %c0_27 = arith.constant 0 : index
      %c0_28 = arith.constant 0 : index
      %c0_29 = arith.constant 0 : index
      %36 = vector.load %arg4[%c0_27, %c0_28, %c0_29] : memref<1x4x1xf32, #tpu.memory_space<vmem>>, vector<1x4x1xf32>
      %37 = vector.shape_cast %36 : vector<1x4x1xf32> to vector<4x1xf32>
      %38 = vector.shape_cast %35 : vector<4x1xf32> to vector<1x4x1xf32>
      tpu.vector_store %arg4[%c0_27, %c0_28, %c0_29], %38 {strides = array<i32>} : memref<1x4x1xf32, #tpu.memory_space<vmem>>, vector<1x4x1xf32>,
    } else {
    }
    %cst = arith.constant 0.000000e+00 : f32
    %3 = vector.broadcast %cst : f32 to vector<4x4xf32>
    %cst_1 = arith.constant 0.000000e+00 : f32
    %4 = vector.broadcast %cst_1 : f32 to vector<4x1xf32>
    %c0 = arith.constant 0 : index
    %c0_2 = arith.constant 0 : index
    %c0_3 = arith.constant 0 : index
    %5 = vector.load %arg2[%c0, %c0_2, %c0_3] : memref<2x4x256xf32, #tpu.memory_space<vmem>>, vector<1x4x256xf32>
    %6 = vector.shape_cast %5 : vector<1x4x256xf32> to vector<4x256xf32>
    %cst_4 = arith.constant dense<0.000000e+00> : vector<4x4xf32>
    %7 = tpu.matmul %6, %6, %cst_4 {dimension_numbers = #tpu.dot_dimension_numbers<[1], [1], [0], [0], [0, 0, 1, 0], [], []>} : vector<4x256xf32>, vector<4x256xf32>, vector<4x4xf32> -> vector<4x4xf32>
    %8 = arith.addf %3, %7 : vector<4x4xf32>
    %cst_5 = arith.constant dense<0.000000e+00> : vector<4xf32>
    %9 = vector.multi_reduction <add>, %6, %cst_5 [1] : vector<4x256xf32> to vector<4xf32>
    %10 = vector.shape_cast %9 : vector<4xf32> to vector<4x1xf32>
    %11 = arith.addf %4, %10 : vector<4x1xf32>
    %c1 = arith.constant 1 : index
    %c0_6 = arith.constant 0 : index
    %c0_7 = arith.constant 0 : index
    %12 = vector.load %arg2[%c1, %c0_6, %c0_7] : memref<2x4x256xf32, #tpu.memory_space<vmem>>, vector<1x4x256xf32>
    %13 = vector.shape_cast %12 : vector<1x4x256xf32> to vector<4x256xf32>
    %cst_8 = arith.constant dense<0.000000e+00> : vector<4x4xf32>
    %14 = tpu.matmul %13, %13, %cst_8 {dimension_numbers = #tpu.dot_dimension_numbers<[1], [1], [0], [0], [0, 0, 1, 0], [], []>} : vector<4x256xf32>, vector<4x256xf32>, vector<4x4xf32> -> vector<4x4xf32>
    %15 = arith.addf %8, %14 : vector<4x4xf32>
    %cst_9 = arith.constant dense<0.000000e+00> : vector<4xf32>
    %16 = vector.multi_reduction <add>, %13, %cst_9 [1] : vector<4x256xf32> to vector<4xf32>
    %17 = vector.shape_cast %16 : vector<4xf32> to vector<4x1xf32>
    %18 = arith.addf %11, %17 : vector<4x1xf32>
    %c0_10 = arith.constant 0 : index
    %c0_11 = arith.constant 0 : index
    %c0_12 = arith.constant 0 : index
    %19 = vector.load %arg3[%c0_10, %c0_11, %c0_12] : memref<1x4x4xf32, #tpu.memory_space<vmem>>, vector<1x4x4xf32>
    %20 = vector.shape_cast %19 : vector<1x4x4xf32> to vector<4x4xf32>
    %21 = arith.addf %20, %15 : vector<4x4xf32>
    %c0_13 = arith.constant 0 : index
    %c0_14 = arith.constant 0 : index
    %c0_15 = arith.constant 0 : index
    %22 = vector.load %arg3[%c0_13, %c0_14, %c0_15] : memref<1x4x4xf32, #tpu.memory_space<vmem>>, vector<1x4x4xf32>
    %23 = vector.shape_cast %22 : vector<1x4x4xf32> to vector<4x4xf32>
    %24 = vector.shape_cast %21 : vector<4x4xf32> to vector<1x4x4xf32>
    tpu.vector_store %arg3[%c0_13, %c0_14, %c0_15], %24 {strides = array<i32>} : memref<1x4x4xf32, #tpu.memory_space<vmem>>, vector<1x4x4xf32>,
    %c0_16 = arith.constant 0 : index
    %c0_17 = arith.constant 0 : index
    %c0_18 = arith.constant 0 : index
    %25 = vector.load %arg4[%c0_16, %c0_17, %c0_18] : memref<1x4x1xf32, #tpu.memory_space<vmem>>, vector<1x4x1xf32>
    %26 = vector.shape_cast %25 : vector<1x4x1xf32> to vector<4x1xf32>
    %27 = arith.addf %26, %18 : vector<4x1xf32>
    %c0_19 = arith.constant 0 : index
    %c0_20 = arith.constant 0 : index
    %c0_21 = arith.constant 0 : index
    %28 = vector.load %arg4[%c0_19, %c0_20, %c0_21] : memref<1x4x1xf32, #tpu.memory_space<vmem>>, vector<1x4x1xf32>
    %29 = vector.shape_cast %28 : vector<1x4x1xf32> to vector<4x1xf32>
    %30 = vector.shape_cast %27 : vector<4x1xf32> to vector<1x4x1xf32>
    tpu.vector_store %arg4[%c0_19, %c0_20, %c0_21], %30 {strides = array<i32>} : memref<1x4x1xf32, #tpu.memory_space<vmem>>, vector<1x4x1xf32>,
    return
  }
  func.func @transform_0(%arg0: i32, %arg1: i32) -> (i32, i32, i32) {
    %c0_i32 = arith.constant 0 : i32
    %c0_i32_0 = arith.constant 0 : i32
    return %arg0, %c0_i32, %arg1 : i32, i32, i32
  }
  func.func @transform_1(%arg0: i32, %arg1: i32) -> (i32, i32, i32) {
    %c0_i32 = arith.constant 0 : i32
    %c0_i32_0 = arith.constant 0 : i32
    %c0_i32_1 = arith.constant 0 : i32
    return %arg0, %c0_i32, %c0_i32_0 : i32, i32, i32
  }
  func.func @transform_2(%arg0: i32, %arg1: i32) -> (i32, i32, i32) {
    %c0_i32 = arith.constant 0 : i32
    %c0_i32_0 = arith.constant 0 : i32
    %c0_i32_1 = arith.constant 0 : i32
    return %arg0, %c0_i32, %c0_i32_0 : i32, i32, i32
  }
}

</mosaic_0001>

<bundles_post_ra>
// kernel: tpu_custom_call.1
= control target key start
LH: loop header
LB: loop body
LE: loop exit
PB: predicated region body
PF: predicated region fallthrough
CT: control target
= control target key end

     0   :  { %8 = vsyncpa [#allocation3], 0  ;;  %s332_s0 = inlined_call_operand.hbm [shape: f32[2,4,256], index: 0, kind: input, shape index: {}]   ;;  %s333_s1 = inlined_call_operand.hbm [shape: f32[1,4,4], index: 1, kind: output, shape index: {0}]   ;;  %s334_s2 = inlined_call_operand.vmem [shape: f32[1,4,1], index: 2, kind: output, shape index: {1}]  }
   0x1   :  { %9 = vsyncpa [#allocation4], 0  ;;  %s277_s9 = smov [#allocation2]   ;;  %s229_s13 = scalar_lea.hbm %s332_s0, 256 }
   0x2   :  { %s15_s10 = sshll.u32 %s277_s9, 4  ;;  %p230_p0 = scmp.ne.s32.totalorder %s332_s0, %s229_s13  ;;  %s16_s10 = int_to_ptr.vmem [resolvable:$true] %s15_s10 }
   0x3   :  { %p233_p1 = scmp.lt.u32.totalorder %s229_s13, %s332_s0 }
   0x5   :  { %p235_p2 = pnand %p233_p1, %p230_p0 }
   0x7   :  { %238 = shalt.err (!%p235_p2)
}
   0x8   :  { %s239_s18 = scalar_lea.vmem %s16_s10, 256  ;;  %p244_p4 = scmp.lt.s32.totalorder %s16_s10, %s16_s10 }
   0x9   :  { %p240_p3 = scmp.ne.s32.totalorder %s16_s10, %s239_s18  ;;  %p245_p5 = scmp.lt.s32.totalorder %s239_s18, %s239_s18 }
   0xb   :  { %p246_p6 = por %p245_p5, %p244_p4 }
   0xd   :  { %p247_p7 = pnand %p246_p6, %p240_p3 }
   0xf   :  { %250 = shalt.err (!%p247_p7)
}
  0x10   :  { %s278_s19 = smov 128   ;;  %s279_s20 = smov 8  }
  0x11   :  { %21 = dma.hbm_to_vmem [thread:$0]  %s332_s0, 256, %s16_s10, [#allocation3], %s278_s19, %s278_s19, %s279_s20  }
  0x12   :  { %273 = dma.done.wait [#allocation3], 256  }
  0x13   :  { %274 = vsyncadd [#allocation3], 4294967040  ;;  %vm29_vm0 = vcmask 27648   ;;  %v280_v0 = vmov 0.0   ;;  %vm37_vm1 = vcmask 1043456   ;;  %v45_v1 = vld [vmem:[#allocation2 + $0x8] sm:$0xff] }
  0x14   :  { %30 = vst.msk [vmem:[#allocation5] sm:$0xf] %vm29_vm0, %v280_v0  ;;  %v33_v2 = vld [vmem:[#allocation2] sm:$0xff]  ;;  %v47_v3 = vcombine.high %v45_v1, %v45_v1  ;;  %v189_v7 = vsel %vm37_vm1, %v45_v1, 0.0  ;;  %vm31_vm2 = vcmask 3072   ;;  %s281_s28 = smov [#allocation5]  }
  0x15   :  { %v35_v4 = vcombine.high %v33_v2, %v33_v2  ;;  %v38_v5 = vsel %vm37_vm1, %v33_v2, 0.0  ;;  %32 = vst.msk [vmem:[%s334_s2] sm:$0xf] %vm31_vm2, %v280_v0  ;;  %s209_s29 = sshll.u32 %s281_s28, 4  ;;  %s210_s29 = int_to_ptr.vmem [resolvable:$true] %s209_s29 }
  0x16   :  { %49 = vmatprep.subr.mxu0 %v47_v3  ;;  %v190_v8 = vsel %vm37_vm1, %v47_v3, 0.0  ;;  %113 = vmatprep.mubr.f32.mxu0 %v47_v3  ;;  %s251_s30 = scalar_lea.vmem %s210_s29, 64  ;;  %p256_p9 = scmp.lt.s32.totalorder %s210_s29, %s210_s29 }
  0x17   :  { %119 = vmatprep.subr.mxu1 %v35_v4  ;;  %v39_v6 = vsel %vm37_vm1, %v35_v4, 0.0  ;;  %50 = vmatpush1.xpose.msra.mxu0 %v45_v1  ;;  %v191_v10 = vadd.f32 %v190_v8, %v189_v7  ;;  %p252_p8 = scmp.ne.s32.totalorder %s210_s29, %s251_s30  ;;  %p257_p10 = scmp.lt.s32.totalorder %s251_s30, %s251_s30 }
  0x18   :  { %120 = vmatpush1.xpose.msra.mxu1 %v33_v2  ;;  %v40_v9 = vadd.f32 %v39_v6, %v38_v5  ;;  %183 = vmatprep.mubr.f32.mxu1 %v35_v4 }
  0x19   :  { %p258_p11 = por %p257_p10, %p256_p9 }
  0x1a   :  { %41 = vadd.xlane.f32.xlu0 %v40_v9  ;;  %114 = vmatmul.mubr.f32.vlgmr.msra.gmra.mrb[0].mxu0 %v45_v1 }
  0x1b   :  { %184 = vmatmul.mubr.f32.vlgmr.msra.gmra.mrb[0].mxu1 %v33_v2  ;;  %v195_v18 = vld [vmem:[#allocation5] sm:$0xf]  ;;  %p259_p12 = pnand %p258_p11, %p252_p8 }
  0x1c   :  { %v199_v13 = vld [vmem:[%s334_s2] sm:$0xf] }
  0x1e   :  { %192 = vadd.xlane.f32.xlu0 %v191_v10 }
  0xa7   :  { %v42_v11 = vpop.xlane.xlu0 %41 }
  0xab   :  { %v193_v12 = vpop.xlane.xlu0 %192 }
  0xac   :  { %v194_v14 = vadd.f32 %v193_v12, %v42_v11 }
  0xae   :  { %v200_v15 = vadd.f32 %v199_v13, %v194_v14 }
  0xb0   :  { %202 = vst.msk [vmem:[%s334_s2] sm:$0xf] %vm31_vm2, %v200_v15 }
  0xed   :  { %v115_v16 = vpop.f32.mrb[0].mxu0 }
  0xee   :  { %v185_v17 = vpop.f32.mrb[0].mxu1  ;;  %v117_v20 = vpop.f32.mrb[1].mxu0 }
  0xef   :  { %v186_v19 = vadd.f32 %v185_v17, %v115_v16  ;;  %v187_v21 = vpop.f32.mrb[1].mxu1 }
  0xf1   :  { %v196_v22 = vadd.f32 %v195_v18, %v186_v19 }
  0xf3   :  { %198 = vst.msk [vmem:[#allocation5] sm:$0xf] %vm29_vm0, %v196_v22 }
  0xf4   :  { %262 = shalt.err (!%p259_p12)
}
  0xf5   :  { %s263_s4 = scalar_lea.hbm %s333_s1, 64 }
  0xf6   :  { %p264_p13 = scmp.ne.s32.totalorder %s333_s1, %s263_s4  ;;  %p267_p0 = scmp.lt.u32.totalorder %s263_s4, %s333_s1 }
  0xf8   :  { %p269_p1 = pnand %p267_p0, %p264_p13 }
  0xfa   :  { %272 = shalt.err (!%p269_p1)
}
  0xfb   :  { %212 = dma.vmem_to_hbm [thread:$0]  %s210_s29, 64, %s333_s1, [#allocation4]  }
  0xfc   :  { %275 = dma.done.wait [#allocation4], 64  }
  0xfd   :  { %276 = vsyncadd [#allocation4], 4294967232 }
  0xfe   :  { %220 = vsyncpa [#allocation3], 1 }
  0xff   :  { %221 = vsyncpa [#allocation4], 1 }

</bundles_post_ra>
